<compile_context>
chip_gen: v6e
topology: v6e:2x2x1
jax: 0.10.0
libtpu: 0.0.40
codegen_flags: <defaults>
</compile_context>

<pallas_src>
import jax
import jax.numpy as jnp
from jax.experimental import pallas as pl
from jax.experimental.pallas import tpu as pltpu

LEAKY_SLOPE = 0.1                      # darknet uses LeakyReLU(0.1)
VMEM_LIMIT_BYTES = 32 * 1024 * 1024    # covers deep-stage weight double-buffers on all gens


# ----------------------------------------------------------------------------
# Pallas kernels
# ----------------------------------------------------------------------------
def _matmul_bn_act_1step_kernel(x_ref, w_ref, s_ref, b_ref, o_ref):
    """Single-K-step conv-as-matmul: no f32 scratch, BN+LeakyReLU fused epilogue."""
    y = jnp.dot(x_ref[...], w_ref[...], preferred_element_type=jnp.float32)
    y = y * s_ref[...] + b_ref[...]
    o_ref[...] = jnp.where(y > 0, y, LEAKY_SLOPE * y).astype(o_ref.dtype)


def _matmul_bn_act_multik_kernel(x_ref, w_ref, s_ref, b_ref, o_ref, acc_ref):
    """K-tiled fallback (not hit by darknet53's K values, kept for generality)."""
    @pl.when(pl.program_id(2) == 0)
    def _():
        acc_ref[...] = jnp.zeros_like(acc_ref)

    acc_ref[...] += jnp.dot(x_ref[...], w_ref[...],
                            preferred_element_type=jnp.float32)

    @pl.when(pl.program_id(2) == pl.num_programs(2) - 1)
    def _():
        y = acc_ref[...] * s_ref[...] + b_ref[...]
        o_ref[...] = jnp.where(y > 0, y, LEAKY_SLOPE * y).astype(o_ref.dtype)


def _residual_block_kernel(x_ref, w1_ref, s1_ref, b1_ref, w2_ref, s2_ref, b2_ref,
                           o_ref, hflat_ref, hpad_ref):
    """Fused residual block: 1x1 conv -> (VMEM) -> 3x3 conv (9 taps) -> +x.

    x_ref/o_ref: (1, H*W, C) bf16; w1: (C, C/2); w2: (9, C/2, C) tap-major;
    hflat/hpad: VMEM scratch holding the 1x1 output and its zero-padded copy.
    Only 2-D matmuls and int+slice ref indexing are used (no in-kernel reshapes).
    """
    Hp, Wp, _ = hpad_ref.shape
    H, W = Hp - 2, Wp - 2

    # 1x1 conv + folded BN + LeakyReLU over all H*W positions in one MXU matmul.
    h = jnp.dot(x_ref[0], w1_ref[...], preferred_element_type=jnp.float32)
    h = h * s1_ref[...] + b1_ref[...]
    hflat_ref[...] = jnp.where(h > 0, h, LEAKY_SLOPE * h).astype(jnp.bfloat16)

    # Zero-padded copy of the intermediate stays resident in VMEM (no HBM trip).
    hpad_ref[...] = jnp.zeros_like(hpad_ref)
    for i in range(H):
        hpad_ref[i + 1, 1:W + 1, :] = hflat_ref[i * W:(i + 1) * W, :]

    # 3x3 conv as in-kernel 9-tap accumulation (one output row per unrolled step),
    # folded BN + LeakyReLU + residual add fused into the epilogue.
    # TODO(synk): for large spatial extents turn the row loop into a fori_loop or a
    # spatial grid axis to bound unrolled code size (fine at these test shapes).
    for i in range(H):
        acc = jnp.dot(hpad_ref[i, 0:W, :], w2_ref[0],
                      preferred_element_type=jnp.float32)
        for t in range(1, 9):
            di, dj = t // 3, t % 3
            acc = acc + jnp.dot(hpad_ref[i + di, dj:dj + W, :], w2_ref[t],
                                preferred_element_type=jnp.float32)
        y = acc * s2_ref[...] + b2_ref[...]
        y = jnp.where(y > 0, y, LEAKY_SLOPE * y)
        y = y + x_ref[0, i * W:(i + 1) * W, :].astype(jnp.float32)   # residual add
        o_ref[0, i * W:(i + 1) * W, :] = y.astype(o_ref.dtype)


# ----------------------------------------------------------------------------
# Tiling + matmul wrapper (standalone convs)
# ----------------------------------------------------------------------------
def _round_up(x, m):
    return (x + m - 1) // m * m


def _choose_tiles(M, N, K):
    """(TM, Mp, TN, Np, TK, Kp).

    Small dims are taken whole (block dim == full dim satisfies the (8,128) rule,
    no 128-padding waste).  N tiles are lane-dense and give >=2 N blocks on the
    wide layers (v7x has 2 TensorCores).  K is taken in a single step whenever the
    double-buffered bf16 weight tile stays under ~10 MiB; otherwise 256-aligned
    K tiles (2x256^2 MXU on v6e/v7x).
    """
    TM = M if M <= 512 else 256
    Mp = _round_up(M, TM)
    if N <= 256:
        TN = N
    elif N <= 512:
        TN = 256
    else:
        TN = 512
    Np = _round_up(N, TN)
    if K * TN * 2 * 2 <= 10 * 1024 * 1024:
        TK, Kp = K, K
    else:
        TK = None
        for cand in (4096, 2304, 2048, 1536, 1024, 768, 512, 256, 128):
            if K % cand == 0:
                TK = cand
                break
        if TK is None:
            TK = 512
        Kp = _round_up(K, TK)
    return TM, Mp, TN, Np, TK, Kp


def fused_matmul_bn_leaky(x2d, w2d, scale, bias):
    """bf16 out = leaky_relu((x2d @ w2d) * scale + bias); f32 accumulation."""
    M, K = x2d.shape
    _, N = w2d.shape
    TM, Mp, TN, Np, TK, Kp = _choose_tiles(M, N, K)

    x2d = x2d.astype(jnp.bfloat16)
    w2d = w2d.astype(jnp.bfloat16)
    xp = x2d if (Mp == M and Kp == K) else jnp.pad(x2d, ((0, Mp - M), (0, Kp - K)))
    wp = w2d if (Kp == K and Np == N) else jnp.pad(w2d, ((0, Kp - K), (0, Np - N)))
    sp = (scale if Np == N else jnp.pad(scale, (0, Np - N)))
    bp = (bias if Np == N else jnp.pad(bias, (0, Np - N)))
    sp = sp.astype(jnp.float32).reshape(1, Np)
    bp = bp.astype(jnp.float32).reshape(1, Np)

    cost = pl.CostEstimate(flops=2 * M * N * K, transcendentals=0,
                           bytes_accessed=2 * (M * K + K * N + M * N) + 8 * N)

    if Kp // TK == 1:
        out = pl.pallas_call(
            _matmul_bn_act_1step_kernel,
            out_shape=jax.ShapeDtypeStruct((Mp, Np), jnp.bfloat16),
            grid_spec=pltpu.PrefetchScalarGridSpec(
                num_scalar_prefetch=0,
                grid=(Mp // TM, Np // TN),
                in_specs=[
                    pl.BlockSpec((TM, TK), lambda i, j: (i, 0)),
                    pl.BlockSpec((TK, TN), lambda i, j: (0, j)),
                    pl.BlockSpec((1, TN), lambda i, j: (0, j)),
                    pl.BlockSpec((1, TN), lambda i, j: (0, j)),
                ],
                out_specs=pl.BlockSpec((TM, TN), lambda i, j: (i, j)),
            ),
            compiler_params=pltpu.CompilerParams(
                dimension_semantics=("parallel", "parallel"),
                vmem_limit_bytes=VMEM_LIMIT_BYTES),
            cost_estimate=cost,
        )(xp, wp, sp, bp)
    else:
        out = pl.pallas_call(
            _matmul_bn_act_multik_kernel,
            out_shape=jax.ShapeDtypeStruct((Mp, Np), jnp.bfloat16),
            grid_spec=pltpu.PrefetchScalarGridSpec(
                num_scalar_prefetch=0,
                grid=(Mp // TM, Np // TN, Kp // TK),
                in_specs=[
                    pl.BlockSpec((TM, TK), lambda i, j, k: (i, k)),
                    pl.BlockSpec((TK, TN), lambda i, j, k: (k, j)),
                    pl.BlockSpec((1, TN), lambda i, j, k: (0, j)),   # K-invariant
                    pl.BlockSpec((1, TN), lambda i, j, k: (0, j)),
                ],
                out_specs=pl.BlockSpec((TM, TN), lambda i, j, k: (i, j)),
                scratch_shapes=[pltpu.VMEM((TM, TN), jnp.float32)],
            ),
            compiler_params=pltpu.CompilerParams(
                dimension_semantics=("parallel", "parallel", "arbitrary"),
                vmem_limit_bytes=VMEM_LIMIT_BYTES),
            cost_estimate=cost,
        )(xp, wp, sp, bp)

    if Mp != M or Np != N:
        out = out[:M, :N]
    return out


# ----------------------------------------------------------------------------
# Layer wrappers
# ----------------------------------------------------------------------------
def _im2col(x, k, stride, pad):
    n, h, w, c = x.shape
    xp = jnp.pad(x, ((0, 0), (pad, pad), (pad, pad), (0, 0)))
    ho = (h + 2 * pad - k) // stride + 1
    wo = (w + 2 * pad - k) // stride + 1
    cols = []
    for di in range(k):
        for dj in range(k):
            cols.append(
                xp[:, di:di + stride * ho:stride, dj:dj + stride * wo:stride, :])
    patches = jnp.concatenate(cols, axis=-1)          # (N, Ho, Wo, k*k*C), tap-major
    return patches.reshape(n * ho * wo, k * k * c), n, ho, wo


def conv_bn_leaky_pallas(x, w, scale, bias, stride, pad):
    """NHWC conv (no bias) + folded BN + LeakyReLU via the Pallas matmul kernel."""
    x = x.astype(jnp.bfloat16)
    w = w.astype(jnp.bfloat16)
    k = w.shape[0]
    cout = w.shape[3]
    n, h, wd, c = x.shape
    if k == 1 and stride == 1 and pad == 0:
        patches, ho, wo = x.reshape(n * h * wd, c), h, wd
    else:
        # TODO(synk): the stride-2 standalone 3x3 convs still materialize an im2col
        # array; an in-kernel strided 9-tap accumulation would remove it entirely.
        patches, n, ho, wo = _im2col(x, k, stride, pad)
    w2d = w.reshape(-1, cout)                         # (kh*kw*Cin, Cout), tap-major
    out2d = fused_matmul_bn_leaky(patches, w2d, scale, bias)
    return out2d.reshape(n, ho, wo, cout)


def conv_bn_leaky_xla(x, w, scale, bias, stride, pad):
    """XLA-native conv path for the Cout<128 early layers (per perf review)."""
    y = jax.lax.conv_general_dilated(
        x.astype(jnp.bfloat16), w.astype(jnp.bfloat16), (stride, stride),
        ((pad, pad), (pad, pad)),
        dimension_numbers=("NHWC", "HWIO", "NHWC"),
        preferred_element_type=jnp.float32)
    y = y * scale.astype(jnp.float32) + bias.astype(jnp.float32)
    return jnp.where(y > 0, y, LEAKY_SLOPE * y).astype(jnp.bfloat16)


def fused_residual_block(p, x):
    """One pallas_call per residual block; the 1x1 output stays in VMEM."""
    n, h, w, c = x.shape
    ch = p["c1"]["w"].shape[3]
    x2 = x.astype(jnp.bfloat16).reshape(n, h * w, c)
    w1 = p["c1"]["w"].astype(jnp.bfloat16).reshape(c, ch)          # (C, C/2)
    w2 = p["c2"]["w"].astype(jnp.bfloat16).reshape(9, ch, c)       # (9, C/2, C), tap-major
    s1 = p["c1"]["scale"].astype(jnp.float32).reshape(1, ch)
    b1 = p["c1"]["bias"].astype(jnp.float32).reshape(1, ch)
    s2 = p["c2"]["scale"].astype(jnp.float32).reshape(1, c)
    b2 = p["c2"]["bias"].astype(jnp.float32).reshape(1, c)

    flops = 2 * n * h * w * (c * ch + 9 * ch * c)
    bytes_accessed = 2 * (2 * n * h * w * c + c * ch + 9 * ch * c) + 8 * (c + ch)

    out = pl.pallas_call(
        _residual_block_kernel,
        out_shape=jax.ShapeDtypeStruct((n, h * w, c), jnp.bfloat16),
        grid_spec=pltpu.PrefetchScalarGridSpec(
            num_scalar_prefetch=0,
            grid=(n,),
            in_specs=[
                pl.BlockSpec((1, h * w, c), lambda b: (b, 0, 0)),
                pl.BlockSpec((c, ch), lambda b: (0, 0)),
                pl.BlockSpec((1, ch), lambda b: (0, 0)),
                pl.BlockSpec((1, ch), lambda b: (0, 0)),
                pl.BlockSpec((9, ch, c), lambda b: (0, 0, 0)),
                pl.BlockSpec((1, c), lambda b: (0, 0)),
                pl.BlockSpec((1, c), lambda b: (0, 0)),
            ],
            out_specs=pl.BlockSpec((1, h * w, c), lambda b: (b, 0, 0)),
            scratch_shapes=[
                pltpu.VMEM((h * w, ch), jnp.bfloat16),            # 1x1 output (flat)
                pltpu.VMEM((h + 2, w + 2, ch), jnp.bfloat16),     # zero-padded copy
            ],
        ),
        compiler_params=pltpu.CompilerParams(
            dimension_semantics=("parallel",),
            vmem_limit_bytes=VMEM_LIMIT_BYTES),
        cost_estimate=pl.CostEstimate(flops=flops, transcendentals=0,
                                      bytes_accessed=bytes_accessed),
    )(x2, w1, s1, b1, w2, s2, b2)
    return out.reshape(n, h, w, c)


# ----------------------------------------------------------------------------
# Deterministic parameter construction (synthetic, inference-mode BN folded).
# ----------------------------------------------------------------------------
def _init_conv_block(key, cin, cout, k):
    kw, kg, kb, km, kv = jax.random.split(key, 5)
    fan_in = cin * k * k
    w = jax.random.normal(kw, (k, k, cin, cout), jnp.float32) * jnp.sqrt(2.0 / fan_in)
    gamma = 1.0 + 0.1 * jax.random.normal(kg, (cout,), jnp.float32)
    beta = 0.1 * jax.random.normal(kb, (cout,), jnp.float32)
    mean = 0.05 * jax.random.normal(km, (cout,), jnp.float32)
    var = jnp.abs(0.1 * jax.random.normal(kv, (cout,), jnp.float32)) + 1.0
    eps = 1e-5
    scale = gamma / jnp.sqrt(var + eps)
    bias = beta - mean * scale
    return {"w": w.astype(jnp.bfloat16), "scale": scale, "bias": bias}


def init_darknet53_params(key, in_planes=3):
    keys = iter(jax.random.split(key, 64))

    def cb(cin, cout, k):
        return _init_conv_block(next(keys), cin, cout, k)

    def rb(planes):
        return {"c1": cb(planes, planes // 2, 1), "c2": cb(planes // 2, planes, 3)}

    params = {}
    params["conv1"] = cb(in_planes, 32, 3)
    params["conv2"] = cb(32, 64, 3)
    params["block1"] = rb(64)
    params["conv3"] = cb(64, 128, 3)
    params["block2"] = [rb(128) for _ in range(2)]
    params["conv4"] = cb(128, 256, 3)
    params["block3"] = [rb(256) for _ in range(8)]
    params["conv5"] = cb(256, 512, 3)
    params["block4"] = [rb(512) for _ in range(8)]
    params["conv6"] = cb(512, 1024, 3)
    params["block5"] = [rb(1024) for _ in range(4)]
    return params


# ----------------------------------------------------------------------------
# Forward pass (mirrors darknet53.forward, returns the 3 detection features)
# ----------------------------------------------------------------------------
def _apply_conv_pallas(p, x, stride, pad):
    return conv_bn_leaky_pallas(x, p["w"], p["scale"], p["bias"], stride, pad)


def _apply_conv_xla(p, x, stride, pad):
    return conv_bn_leaky_xla(x, p["w"], p["scale"], p["bias"], stride, pad)


def darknet53_forward(params, x_nchw):
    x = jnp.transpose(x_nchw, (0, 2, 3, 1)).astype(jnp.bfloat16)   # NCHW -> NHWC
    out = _apply_conv_xla(params["conv1"], x, 1, 1)     # Cout=32 (<128 lanes) -> XLA conv
    out = _apply_conv_xla(params["conv2"], out, 2, 1)   # Cout=64 (<128 lanes) -> XLA conv
    out = fused_residual_block(params["block1"], out)
    out = _apply_conv_pallas(params["conv3"], out, 2, 1)
    for p in params["block2"]:
        out = fused_residual_block(p, out)
    out = _apply_conv_pallas(params["conv4"], out, 2, 1)
    for p in params["block3"]:
        out = fused_residual_block(p, out)
    feats = [out]
    out = _apply_conv_pallas(params["conv5"], out, 2, 1)
    for p in params["block4"]:
        out = fused_residual_block(p, out)
    feats.append(out)
    out = _apply_conv_pallas(params["conv6"], out, 2, 1)
    for p in params["block5"]:
        out = fused_residual_block(p, out)
    feats.append(out)
    # back to NCHW float32 to match the PyTorch output convention
    return [jnp.transpose(f.astype(jnp.float32), (0, 3, 1, 2)) for f in feats]


# ----------------------------------------------------------------------------
# Pure-XLA reference (same bf16 storage / f32 accumulation points) for checks
# ----------------------------------------------------------------------------
def _residual_block_ref(p, x):
    h = jax.lax.conv_general_dilated(
        x.astype(jnp.bfloat16), p["c1"]["w"].astype(jnp.bfloat16), (1, 1),
        ((0, 0), (0, 0)), dimension_numbers=("NHWC", "HWIO", "NHWC"),
        preferred_element_type=jnp.float32)
    h = h * p["c1"]["scale"] + p["c1"]["bias"]
    h = jnp.where(h > 0, h, LEAKY_SLOPE * h).astype(jnp.bfloat16)
    y = jax.lax.conv_general_dilated(
        h, p["c2"]["w"].astype(jnp.bfloat16), (1, 1), ((1, 1), (1, 1)),
        dimension_numbers=("NHWC", "HWIO", "NHWC"),
        preferred_element_type=jnp.float32)
    y = y * p["c2"]["scale"] + p["c2"]["bias"]
    y = jnp.where(y > 0, y, LEAKY_SLOPE * y)
    return (y + x.astype(jnp.float32)).astype(jnp.bfloat16)


def darknet53_forward_ref(params, x_nchw):
    x = jnp.transpose(x_nchw, (0, 2, 3, 1)).astype(jnp.bfloat16)
    out = _apply_conv_xla(params["conv1"], x, 1, 1)
    out = _apply_conv_xla(params["conv2"], out, 2, 1)
    out = _residual_block_ref(params["block1"], out)
    out = _apply_conv_xla(params["conv3"], out, 2, 1)
    for p in params["block2"]:
        out = _residual_block_ref(p, out)
    out = _apply_conv_xla(params["conv4"], out, 2, 1)
    for p in params["block3"]:
        out = _residual_block_ref(p, out)
    feats = [out]
    out = _apply_conv_xla(params["conv5"], out, 2, 1)
    for p in params["block4"]:
        out = _residual_block_ref(p, out)
    feats.append(out)
    out = _apply_conv_xla(params["conv6"], out, 2, 1)
    for p in params["block5"]:
        out = _residual_block_ref(p, out)
    feats.append(out)
    return [jnp.transpose(f.astype(jnp.float32), (0, 3, 1, 2)) for f in feats]


def _max_rel_err(a, b):
    a = jnp.asarray(a, jnp.float32)
    b = jnp.asarray(b, jnp.float32)
    return float(jnp.max(jnp.abs(a - b)) / (jnp.max(jnp.abs(b)) + 1e-6))


# TODO(synk): load_weight / load_part (reading a .weights file) is host-side file
# I/O with no kernel equivalent; parameters are synthesized in-script instead.

if __name__ == "__main__":
    key = jax.random.PRNGKey(0)
    kx, kp, k1, k2 = jax.random.split(key, 4)
    x = jax.random.normal(kx, (2, 3, 32, 32), jnp.float32)   # NCHW input, like PyTorch
    params = init_darknet53_params(kp, in_planes=3)

    # --- unit check: standalone Pallas conv (conv3-shaped) vs XLA conv -----------
    xc = jax.random.normal(k1, (2, 16, 16, 64), jnp.float32).astype(jnp.bfloat16)
    p3 = params["conv3"]
    got = conv_bn_leaky_pallas(xc, p3["w"], p3["scale"], p3["bias"], 2, 1)
    ref = conv_bn_leaky_xla(xc, p3["w"], p3["scale"], p3["bias"], 2, 1)
    assert _max_rel_err(got, ref) < 2e-2, "pallas conv kernel mismatch"

    # --- unit check: fused residual block vs XLA reference -----------------------
    xr = jax.random.normal(k2, (2, 8, 8, 128), jnp.float32).astype(jnp.bfloat16)
    pb = params["block2"][0]
    got = fused_residual_block(pb, xr)
    ref = _residual_block_ref(pb, xr)
    assert _max_rel_err(got, ref) < 2e-2, "fused residual block kernel mismatch"

    # --- full forward -------------------------------------------------------------
    fwd = jax.jit(darknet53_forward)
    feats = jax.block_until_ready(fwd(params, x))
    expected = [(2, 256, 4, 4), (2, 512, 2, 2), (2, 1024, 1, 1)]
    assert [tuple(f.shape) for f in feats] == expected, [f.shape for f in feats]
    assert all(f.dtype == jnp.float32 for f in feats)
    assert all(bool(jnp.all(jnp.isfinite(f))) for f in feats)

    # --- end-to-end drift check vs the XLA reference (same rounding points) ------
    ref_feats = jax.block_until_ready(jax.jit(darknet53_forward_ref)(params, x))
    for f, rf in zip(feats, ref_feats):
        assert _max_rel_err(f, rf) < 7.5e-2, "end-to-end mismatch vs XLA reference"

    print("KERNEL_OK")
</pallas_src>

<mosaic_0001>
module attributes {stable_mosaic.version = 11 : i64} {
  func.func @_matmul_bn_act_1step_kernel(%arg0: i32, %arg1: i32, %arg2: memref<128x576xbf16, #tpu.memory_space<vmem>>, %arg3: memref<576x128xbf16, #tpu.memory_space<vmem>>, %arg4: memref<1x128xf32, #tpu.memory_space<vmem>>, %arg5: memref<1x128xf32, #tpu.memory_space<vmem>>, %arg6: memref<128x128xbf16, #tpu.memory_space<vmem>>) attributes {dimension_semantics = [#tpu.dimension_semantics<parallel>, #tpu.dimension_semantics<parallel>], iteration_bounds = array<i64: 1, 1>, scalar_prefetch = 0 : i64, scratch_operands = 0 : i64, tpu.core_type = #tpu.core_type<tc>, window_params = [{transform_indices = @transform_0, window_bounds = array<i64: 128, 576>}, {transform_indices = @transform_1, window_bounds = array<i64: 576, 128>}, {transform_indices = @transform_2, window_bounds = array<i64: 1, 128>}, {transform_indices = @transform_3, window_bounds = array<i64: 1, 128>}, {transform_indices = @transform_4, window_bounds = array<i64: 128, 128>}]} {
    %c0 = arith.constant 0 : index
    %c0_0 = arith.constant 0 : index
    %0 = vector.load %arg2[%c0, %c0_0] : memref<128x576xbf16, #tpu.memory_space<vmem>>, vector<128x576xbf16>
    %c0_1 = arith.constant 0 : index
    %c0_2 = arith.constant 0 : index
    %1 = vector.load %arg3[%c0_1, %c0_2] : memref<576x128xbf16, #tpu.memory_space<vmem>>, vector<576x128xbf16>
    %cst = arith.constant dense<0.000000e+00> : vector<128x128xf32>
    %2 = tpu.matmul %0, %1, %cst {dimension_numbers = #tpu.dot_dimension_numbers<[1], [0], [0], [1], [0, 0, 1, 1], [], []>} : vector<128x576xbf16>, vector<576x128xbf16>, vector<128x128xf32> -> vector<128x128xf32>
    %c0_3 = arith.constant 0 : index
    %c0_4 = arith.constant 0 : index
    %3 = vector.load %arg4[%c0_3, %c0_4] : memref<1x128xf32, #tpu.memory_space<vmem>>, vector<1x128xf32>
    %4 = vector.broadcast %3 : vector<1x128xf32> to vector<128x128xf32>
    %5 = arith.mulf %2, %4 : vector<128x128xf32>
    %c0_5 = arith.constant 0 : index
    %c0_6 = arith.constant 0 : index
    %6 = vector.load %arg5[%c0_5, %c0_6] : memref<1x128xf32, #tpu.memory_space<vmem>>, vector<1x128xf32>
    %7 = vector.broadcast %6 : vector<1x128xf32> to vector<128x128xf32>
    %8 = arith.addf %5, %7 : vector<128x128xf32>
    %cst_7 = arith.constant 0.000000e+00 : f32
    %9 = vector.broadcast %cst_7 : f32 to vector<128x128xf32>
    %10 = arith.cmpf ogt, %8, %9 : vector<128x128xf32>
    %cst_8 = arith.constant 1.000000e-01 : f32
    %11 = vector.broadcast %cst_8 : f32 to vector<128x128xf32>
    %12 = arith.mulf %11, %8 : vector<128x128xf32>
    %13 = arith.select %10, %8, %12 : vector<128x128xi1>, vector<128x128xf32>
    %14 = arith.truncf %13 : vector<128x128xf32> to vector<128x128xbf16>
    %c0_9 = arith.constant 0 : index
    %c0_10 = arith.constant 0 : index
    %15 = vector.load %arg6[%c0_9, %c0_10] : memref<128x128xbf16, #tpu.memory_space<vmem>>, vector<128x128xbf16>
    tpu.vector_store %arg6[%c0_9, %c0_10], %14 {strides = array<i32>} : memref<128x128xbf16, #tpu.memory_space<vmem>>, vector<128x128xbf16>,
    return
  }
  func.func @transform_0(%arg0: i32, %arg1: i32) -> (i32, i32) {
    %c0_i32 = arith.constant 0 : i32
    %c0_i32_0 = arith.constant 0 : i32
    return %arg0, %c0_i32 : i32, i32
  }
  func.func @transform_1(%arg0: i32, %arg1: i32) -> (i32, i32) {
    %c0_i32 = arith.constant 0 : i32
    %c0_i32_0 = arith.constant 0 : i32
    return %c0_i32, %arg1 : i32, i32
  }
  func.func @transform_2(%arg0: i32, %arg1: i32) -> (i32, i32) {
    %c0_i32 = arith.constant 0 : i32
    %c0_i32_0 = arith.constant 0 : i32
    return %c0_i32, %arg1 : i32, i32
  }
  func.func @transform_3(%arg0: i32, %arg1: i32) -> (i32, i32) {
    %c0_i32 = arith.constant 0 : i32
    %c0_i32_0 = arith.constant 0 : i32
    return %c0_i32, %arg1 : i32, i32
  }
  func.func @transform_4(%arg0: i32, %arg1: i32) -> (i32, i32) {
    %c0_i32 = arith.constant 0 : i32
    return %arg0, %arg1 : i32, i32
  }
}

</mosaic_0001>

<bundles_post_ra>
// kernel: tpu_custom_call.1
= control target key start
LH: loop header
LB: loop body
LE: loop exit
PB: predicated region body
PF: predicated region fallthrough
CT: control target
= control target key end

     0   :  { %s1863_s0 = inlined_call_operand.vmem [shape: bf16[128,576], index: 0, kind: input, shape index: {}]   ;;  %s1864_s1 = inlined_call_operand.vmem [shape: bf16[576,128], index: 1, kind: input, shape index: {}]   ;;  %s1865_s2 = inlined_call_operand.vmem [shape: f32[1,128], index: 2, kind: input, shape index: {}]   ;;  %s1866_s3 = inlined_call_operand.vmem [shape: f32[1,128], index: 3, kind: input, shape index: {}]   ;;  %s1867_s4 = inlined_call_operand.hbm [shape: bf16[128,128], index: 4, kind: output, shape index: {}]  }
   0x1   :  { %v1401_v0 = vld [vmem:[%s1864_s1 + $0x78] sm:$0xff]   ;;  %v1405_v4 = vld [vmem:[%s1864_s1 + $0x70] sm:$0xff]   ;;  %v1409_v8 = vld [vmem:[%s1864_s1 + $0x68] sm:$0xff]  }
   0x2   :  { %v1402_v1 = vld [vmem:[%s1864_s1 + $0xf8] sm:$0xff]   ;;  %1226 = vmatprep.subr.bf16.mxu0 %v1401_v0  ;;  %v1406_v5 = vld [vmem:[%s1864_s1 + $0xf0] sm:$0xff]   ;;  %v1410_v9 = vld [vmem:[%s1864_s1 + $0xe8] sm:$0xff]  }
   0x3   :  { %v1403_v2 = vld [vmem:[%s1864_s1 + $0x38] sm:$0xff]   ;;  %1290 = vmatprep.subr.bf16.mxu1 %v1402_v1  ;;  %v1407_v6 = vld [vmem:[%s1864_s1 + $0x30] sm:$0xff]   ;;  %v1411_v10 = vld [vmem:[%s1864_s1 + $0x28] sm:$0xff]  }
   0x4   :  { %v1404_v3 = vld [vmem:[%s1864_s1 + $0xb8] sm:$0xff]   ;;  %1227 = vmatpush3.bf16.msra.mxu0 %v1403_v2  ;;  %v1408_v7 = vld [vmem:[%s1864_s1 + $0xb0] sm:$0xff]   ;;  %v1412_v11 = vld [vmem:[%s1864_s1 + $0xa8] sm:$0xff]  }
   0x5   :  { %1291 = vmatpush3.bf16.msra.mxu1 %v1404_v3  ;;  %1228 = vmatprep.subr.bf16.mxu0 %v1405_v4  ;;  %v1413_v12 = vld [vmem:[%s1864_s1 + $0x60] sm:$0xff]   ;;  %v1417_v16 = vld [vmem:[%s1864_s1 + $0x58] sm:$0xff]   ;;  %v1421_v20 = vld [vmem:[%s1864_s1 + $0x50] sm:$0xff]  }
   0x6   :  { %1292 = vmatprep.subr.bf16.mxu1 %v1406_v5  ;;  %v1414_v13 = vld [vmem:[%s1864_s1 + $0xe0] sm:$0xff]   ;;  %v1418_v17 = vld [vmem:[%s1864_s1 + $0xd8] sm:$0xff]   ;;  %v1422_v21 = vld [vmem:[%s1864_s1 + $0xd0] sm:$0xff]  }
   0x7   :  { %v1415_v14 = vld [vmem:[%s1864_s1 + $0x20] sm:$0xff]   ;;  %v1419_v18 = vld [vmem:[%s1864_s1 + $0x18] sm:$0xff]   ;;  %v1423_v22 = vld [vmem:[%s1864_s1 + $0x10] sm:$0xff]  }
   0x8   :  { %1229 = vmatpush3.bf16.msra.mxu0 %v1407_v6  ;;  %v1416_v15 = vld [vmem:[%s1864_s1 + $0xa0] sm:$0xff]   ;;  %v1420_v19 = vld [vmem:[%s1864_s1 + $0x98] sm:$0xff]   ;;  %v1424_v23 = vld [vmem:[%s1864_s1 + $0x90] sm:$0xff]  }
   0x9   :  { %1293 = vmatpush3.bf16.msra.mxu1 %v1408_v7  ;;  %1230 = vmatprep.subr.bf16.mxu0 %v1409_v8  ;;  %v1425_v24 = vld [vmem:[%s1864_s1 + $0x48] sm:$0xff]   ;;  %v1429_v28 = vld [vmem:[%s1864_s1 + $0x40] sm:$0xff]   ;;  %v1439_v36 = vld [vmem:[%s1864_s1 + $0x118] sm:$0xff]  }
   0xa   :  { %1294 = vmatprep.subr.bf16.mxu1 %v1410_v9  ;;  %v1426_v25 = vld [vmem:[%s1864_s1 + $0xc8] sm:$0xff]   ;;  %v1430_v29 = vld [vmem:[%s1864_s1 + $0xc0] sm:$0xff]   ;;  %v1452_v42 = vld [vmem:[%s1864_s1 + $0x110] sm:$0xff]  }
   0xb   :  { %v1427_v26 = vld [vmem:[%s1864_s1 + $0x8] sm:$0xff]   ;;  %v1431_v30 = vld [vmem:[%s1864_s1] sm:$0xff]   ;;  %v1448_v43 = vld [vmem:[%s1863_s0 + $0x5c] ss:$20 sps:$4 sm:$0xff]  }
   0xc   :  { %1231 = vmatpush3.bf16.msra.mxu0 %v1411_v10  ;;  %v1428_v27 = vld [vmem:[%s1864_s1 + $0x88] sm:$0xff]   ;;  %v1432_v31 = vld [vmem:[%s1864_s1 + $0x80] sm:$0xff]   ;;  %v1453_v47 = vld [vmem:[%s1863_s0 + $0x7c] ss:$20 sps:$4 sm:$0xff]  }
   0xd   :  { %1295 = vmatpush3.bf16.msra.mxu1 %v1412_v11  ;;  %1232 = vmatprep.subr.bf16.mxu0 %v1413_v12  ;;  %v1433_v32 = vld [vmem:[%s1863_s0] ss:$20 sps:$4 sm:$0xff]   ;;  %v1435_v33 = vld [vmem:[%s1863_s0 + $0x4] ss:$20 sps:$4 sm:$0xff]   ;;  %v1436_v34 = vld [vmem:[%s1863_s0 + $0x8] ss:$20 sps:$4 sm:$0xff]  }
   0xe   :  { %1296 = vmatprep.subr.bf16.mxu1 %v1414_v13  ;;  %v1438_v35 = vld [vmem:[%s1863_s0 + $0xc] ss:$20 sps:$4 sm:$0xff]   ;;  %612 = vmatprep.mubr.bf16.mxu0 %v1435_v33  ;;  %v1442_v38 = vld [vmem:[%s1863_s0 + $0x34] ss:$20 sps:$4 sm:$0xff]   ;;  %v1445_v40 = vld [vmem:[%s1863_s0 + $0x30] ss:$20 sps:$4 sm:$0xff]  }
   0xf   :  { %709 = vmatprep.mubr.bf16.mxu1 %v1438_v35  ;;  %v1440_v37 = vld [vmem:[%s1863_s0 + $0x2c] ss:$20 sps:$4 sm:$0xff]   ;;  %v1444_v39 = vld [vmem:[%s1863_s0 + $0x28] ss:$20 sps:$4 sm:$0xff]   ;;  %v1450_v44 = vld [vmem:[%s1863_s0 + $0x50] ss:$20 sps:$4 sm:$0xff]  }
  0x10   :  { %1233 = vmatpush3.bf16.msra.mxu0 %v1415_v14  ;;  %v1446_v41 = vld [vmem:[%s1863_s0 + $0x54] ss:$20 sps:$4 sm:$0xff]   ;;  %v1451_v45 = vld [vmem:[%s1863_s0 + $0x58] ss:$20 sps:$4 sm:$0xff]   ;;  %v1478_v49 = vld [vmem:[%s1864_s1 + $0x100] sm:$0xff]  }
  0x11   :  { %1297 = vmatpush3.bf16.msra.mxu1 %v1416_v15  ;;  %1234 = vmatprep.subr.bf16.mxu0 %v1417_v16  ;;  %v1465_v46 = vld [vmem:[%s1864_s1 + $0x108] sm:$0xff]   ;;  %v1455_v48 = vld [vmem:[%s1863_s0 + $0x84] ss:$20 sps:$4 sm:$0xff]   ;;  %v1458_v51 = vld [vmem:[%s1863_s0 + $0x80] ss:$20 sps:$4 sm:$0xff]  }
  0x12   :  { %1298 = vmatprep.subr.bf16.mxu1 %v1418_v17  ;;  %v1457_v50 = vld [vmem:[%s1863_s0 + $0x78] ss:$20 sps:$4 sm:$0xff]   ;;  %v1463_v54 = vld [vmem:[%s1863_s0 + $0xa0] ss:$20 sps:$4 sm:$0xff]   ;;  %v1464_v55 = vld [vmem:[%s1863_s0 + $0xa8] ss:$20 sps:$4 sm:$0xff]  }
  0x13   :  { %v1459_v52 = vld [vmem:[%s1863_s0 + $0xa4] ss:$20 sps:$4 sm:$0xff]   ;;  %v1461_v53 = vld [vmem:[%s1863_s0 + $0xac] ss:$20 sps:$4 sm:$0xff]  }
  0x14   :  { %1235 = vmatpush3.bf16.msra.mxu0 %v1419_v18  ;;  %v1466_v56 = vld [vmem:[%s1863_s0 + $0xcc] ss:$20 sps:$4 sm:$0xff]  }
  0x15   :  { %1299 = vmatpush3.bf16.msra.mxu1 %v1420_v19  ;;  %1236 = vmatprep.subr.bf16.mxu0 %v1421_v20 }
  0x16   :  { %1300 = vmatprep.subr.bf16.mxu1 %v1422_v21 }
  0x18   :  { %1237 = vmatpush3.bf16.msra.mxu0 %v1423_v22 }
  0x19   :  { %1301 = vmatpush3.bf16.msra.mxu1 %v1424_v23  ;;  %1238 = vmatprep.subr.bf16.mxu0 %v1425_v24 }
  0x1a   :  { %1302 = vmatprep.subr.bf16.mxu1 %v1426_v25 }
  0x1c   :  { %1239 = vmatpush3.bf16.msra.mxu0 %v1427_v26 }
  0x1d   :  { %1303 = vmatpush3.bf16.msra.mxu1 %v1428_v27  ;;  %1240 = vmatprep.subr.bf16.mxu0 %v1429_v28 }
  0x1e   :  { %1304 = vmatprep.subr.bf16.mxu1 %v1430_v29 }
  0x20   :  { %1241 = vmatpush3.bf16.msra.mxu0 %v1431_v30 }
  0x21   :  { %1305 = vmatpush3.bf16.msra.mxu1 %v1432_v31  ;;  %1366 = vmatprep.subr.bf16.mxu0 %v1439_v36 }
  0x22   :  { %1390 = vmatprep.subr.bf16.mxu1 %v1439_v36 }
  0x23   :  { %613 = vmatmul.mubr.bf16.vlgmr.msra.gmra.mxu0 %v1433_v32 }
  0x24   :  { %710 = vmatmul.mubr.bf16.vlgmr.msra.gmra.mxu1 %v1436_v34  ;;  %1367 = vmatpush3.bf16.msra.mxu0 %v1439_v36 }
  0x25   :  { %1394 = vmatpush3.bf16.msra.mxu1 %v1439_v36  ;;  %620 = vmatprep.mubr.bf16.mxu0 %v1440_v37 }
  0x26   :  { %717 = vmatprep.mubr.bf16.mxu1 %v1442_v38  ;;  %1368 = vmatprep.subr.bf16.mxu0 %v1452_v42 }
  0x27   :  { %1391 = vmatprep.subr.bf16.mxu1 %v1452_v42 }
  0x28   :  { %1369 = vmatpush3.bf16.msra.mxu0 %v1452_v42 }
  0x29   :  { %1395 = vmatpush3.bf16.msra.mxu1 %v1452_v42  ;;  %1370 = vmatprep.subr.bf16.mxu0 %v1465_v46 }
  0x2a   :  { %1392 = vmatprep.subr.bf16.mxu1 %v1465_v46 }
  0x2b   :  { %621 = vmatmul.mubr.bf16.gmra.mxu0 %v1444_v39 }
  0x2c   :  { %718 = vmatmul.mubr.bf16.gmra.mxu1 %v1445_v40  ;;  %628 = vmatprep.mubr.bf16.mxu0 %v1446_v41 }
  0x2d   :  { %725 = vmatprep.mubr.bf16.mxu1 %v1448_v43  ;;  %1371 = vmatpush3.bf16.msra.mxu0 %v1465_v46 }
  0x2e   :  { %1396 = vmatpush3.bf16.msra.mxu1 %v1465_v46  ;;  %1372 = vmatprep.subr.bf16.mxu0 %v1478_v49 }
  0x2f   :  { %1393 = vmatprep.subr.bf16.mxu1 %v1478_v49 }
  0x31   :  { %1373 = vmatpush3.bf16.msra.mxu0 %v1478_v49 }
  0x32   :  { %1397 = vmatpush3.bf16.msra.mxu1 %v1478_v49 }
  0x33   :  { %629 = vmatmul.mubr.bf16.gmra.mxu0 %v1450_v44 }
  0x34   :  { %726 = vmatmul.mubr.bf16.gmra.mxu1 %v1451_v45  ;;  %636 = vmatprep.mubr.bf16.mxu0 %v1453_v47 }
  0x35   :  { %733 = vmatprep.mubr.bf16.mxu1 %v1455_v48 }
  0x3b   :  { %637 = vmatmul.mubr.bf16.gmra.mxu0 %v1457_v50 }
  0x3c   :  { %734 = vmatmul.mubr.bf16.gmra.mxu1 %v1458_v51  ;;  %644 = vmatprep.mubr.bf16.mxu0 %v1459_v52 }
  0x3d   :  { %741 = vmatprep.mubr.bf16.mxu1 %v1461_v53 }
  0x3e   :  { %9 = vsyncpa [#allocation3], 0  ;;  %v1468_v57 = vld [vmem:[%s1863_s0 + $0xd4] ss:$20 sps:$4 sm:$0xff]   ;;  %v1471_v59 = vld [vmem:[%s1863_s0 + $0xd0] ss:$20 sps:$4 sm:$0xff]  }
  0x3f   :  { %v1470_v58 = vld [vmem:[%s1863_s0 + $0xc8] ss:$20 sps:$4 sm:$0xff]   ;;  %v1476_v62 = vld [vmem:[%s1863_s0 + $0xf0] ss:$20 sps:$4 sm:$0xff]   ;;  %v1477_v63 = vld [vmem:[%s1863_s0 + $0xf8] ss:$20 sps:$4 sm:$0xff]  }
  0x40   :  { %v1472_v60 = vld [vmem:[%s1863_s0 + $0xf4] ss:$20 sps:$4 sm:$0xff]   ;;  %v1474_v61 = vld [vmem:[%s1863_s0 + $0xfc] ss:$20 sps:$4 sm:$0xff]   ;;  %v1481_v1 = vld [vmem:[%s1863_s0 + $0x124] ss:$20 sps:$4 sm:$0xff]  }
  0x41   :  { %v1479_v0 = vld [vmem:[%s1863_s0 + $0x11c] ss:$20 sps:$4 sm:$0xff]   ;;  %v1483_v2 = vld [vmem:[%s1863_s0 + $0x118] ss:$20 sps:$4 sm:$0xff]   ;;  %v1484_v3 = vld [vmem:[%s1863_s0 + $0x120] ss:$20 sps:$4 sm:$0xff]  }
  0x42   :  { %v1485_v4 = vld [vmem:[%s1863_s0 + $0x10] ss:$20 sps:$4 sm:$0xff]   ;;  %vm555_vm0 = vcmask 523264   ;;  %v1487_v6 = vld [vmem:[%s1863_s0 + $0x38] ss:$20 sps:$4 sm:$0xff]  }
  0x43   :  { %645 = vmatmul.mubr.bf16.gmra.mxu0 %v1463_v54  ;;  %v1486_v5 = vld [vmem:[%s1863_s0 + $0xb0] ss:$20 sps:$4 sm:$0xff]   ;;  %v1488_v7 = vld [vmem:[%s1863_s0 + $0xd8] ss:$20 sps:$4 sm:$0xff]   ;;  %v1489_v8 = vld [vmem:[%s1863_s0 + $0x60] ss:$20 sps:$4 sm:$0xff]  }
  0x44   :  { %742 = vmatmul.mubr.bf16.gmra.mxu1 %v1464_v55  ;;  %652 = vmatprep.mubr.bf16.mxu0 %v1466_v56  ;;  %v1490_v9 = vld [vmem:[%s1863_s0 + $0x100] ss:$20 sps:$4 sm:$0xff]   ;;  %v1491_v10 = vld [vmem:[%s1863_s0 + $0x88] ss:$20 sps:$4 sm:$0xff]  }
  0x45   :  { %749 = vmatprep.mubr.bf16.mxu1 %v1468_v57  ;;  %v1492_v11 = vld [vmem:[%s1863_s0 + $0x128] ss:$20 sps:$4 sm:$0xff]  }
  0x4b   :  { %653 = vmatmul.mubr.bf16.gmra.mxu0 %v1470_v58 }
  0x4c   :  { %750 = vmatmul.mubr.bf16.gmra.mxu1 %v1471_v59  ;;  %660 = vmatprep.mubr.bf16.mxu0 %v1472_v60 }
  0x4d   :  { %757 = vmatprep.mubr.bf16.mxu1 %v1474_v61 }
  0x53   :  { %661 = vmatmul.mubr.bf16.gmra.mxu0 %v1476_v62 }
  0x54   :  { %758 = vmatmul.mubr.bf16.gmra.mxu1 %v1477_v63  ;;  %668 = vmatprep.mubr.bf16.mxu0 %v1479_v0 }
  0x55   :  { %765 = vmatprep.mubr.bf16.mxu1 %v1481_v1 }
  0x5b   :  { %669 = vmatmul.mubr.bf16.gmra.mxu0 %v1483_v2 }
  0x5c   :  { %766 = vmatmul.mubr.bf16.gmra.mxu1 %v1484_v3  ;;  %1374 = vmatprep.mubr.msk.bf16.mxu0 %vm555_vm0, %v1485_v4 }
  0x5d   :  { %1382 = vmatprep.mubr.msk.bf16.mxu1 %vm555_vm0, %v1486_v5 }
  0x63   :  { %1375 = vmatmul.mubr.msk.bf16.vlgmr.msra.gmra.mxu0 %vm555_vm0, %v1487_v6 }
  0x64   :  { %1383 = vmatmul.mubr.msk.bf16.vlgmr.msra.gmra.mxu1 %vm555_vm0, %v1488_v7  ;;  %1378 = vmatprep.mubr.msk.bf16.mxu0 %vm555_vm0, %v1489_v8 }
  0x65   :  { %1386 = vmatprep.mubr.msk.bf16.mxu1 %vm555_vm0, %v1490_v9 }
  0x6b   :  { %1379 = vmatmul.mubr.msk.bf16.gmra.mxu0 %vm555_vm0, %v1491_v10 }
  0x6c   :  { %1387 = vmatmul.mubr.msk.bf16.gmra.mxu1 %vm555_vm0, %v1492_v11 }
  0xe3   :  { %v1242_v12 = vpop.f32.mrf.mxu0 }
  0xe4   :  { %v1306_v13 = vpop.f32.mrf.mxu1 }
  0xe5   :  { %v1243_v14 = vpop.f32.mrf.mxu0 }
  0xe6   :  { %v1244_v15 = vadd.f32 %v1243_v14, %v1242_v12  ;;  %v1307_v16 = vpop.f32.mrf.mxu1 }
  0xe7   :  { %v1308_v17 = vadd.f32 %v1307_v16, %v1306_v13  ;;  %v1245_v18 = vpop.f32.mrf.mxu0 }
  0xe8   :  { %v1309_v19 = vpop.f32.mrf.mxu1 }
  0xe9   :  { %v1246_v20 = vpop.f32.mrf.mxu0  ;;  %v1779_v21 = vadd.f32 %v1308_v17, %v1244_v15 }
  0xea   :  { %v1247_v22 = vadd.f32 %v1246_v20, %v1245_v18  ;;  %v1310_v23 = vpop.f32.mrf.mxu1 }
  0xeb   :  { %v1311_v24 = vadd.f32 %v1310_v23, %v1309_v19  ;;  %v1248_v25 = vpop.f32.mrf.mxu0 }
  0xec   :  { %v1312_v26 = vpop.f32.mrf.mxu1 }
  0xed   :  { %v1249_v27 = vpop.f32.mrf.mxu0  ;;  %v1781_v28 = vadd.f32 %v1311_v24, %v1247_v22 }
  0xee   :  { %v1313_v29 = vpop.f32.mrf.mxu1  ;;  %v1250_v15 = vadd.f32 %v1249_v27, %v1248_v25 }
  0xef   :  { %1868 = vst [vmem:[#allocation5_spill] sm:$0xff] %v1781_v28  ;;  %v1251_v30 = vpop.f32.mrf.mxu0  ;;  %v1314_v16 = vadd.f32 %v1313_v29, %v1312_v26 }
  0xf0   :  { %v1315_v31 = vpop.f32.mrf.mxu1 }
  0xf1   :  { %v1252_v32 = vpop.f32.mrf.mxu0 }
  0xf2   :  { %v1316_v33 = vpop.f32.mrf.mxu1  ;;  %v1253_v19 = vadd.f32 %v1252_v32, %v1251_v30  ;;  %v1796_v32 = vld [vmem:[%s1865_s2] ss:$0 sm:$0xff]  ;;  %s1515_s2 = smov [#allocation2]  }
  0xf3   :  { %v1254_v34 = vpop.f32.mrf.mxu0  ;;  %v1317_v20 = vadd.f32 %v1316_v33, %v1315_v31 }
  0xf4   :  { %v1318_v35 = vpop.f32.mrf.mxu1 }
  0xf5   :  { %v1255_v36 = vpop.f32.mrf.mxu0 }
  0xf6   :  { %v1256_v37 = vadd.f32 %v1255_v36, %v1254_v34  ;;  %v1319_v38 = vpop.f32.mrf.mxu1 }
  0xf7   :  { %v1320_v39 = vadd.f32 %v1319_v38, %v1318_v35  ;;  %v1257_v40 = vpop.f32.mrf.mxu0 }
  0xf8   :  { %v1321_v41 = vpop.f32.mrf.mxu1 }
  0xf9   :  { %v1258_v42 = vpop.f32.mrf.mxu0  ;;  %v1783_v43 = vadd.f32 %v1320_v39, %v1256_v37 }
  0xfa   :  { %v1322_v44 = vpop.f32.mrf.mxu1  ;;  %v1259_v34 = vadd.f32 %v1258_v42, %v1257_v40  ;;  %v723_v42 = vadd.f32 %v1317_v20, %v1253_v19 }
  0xfb   :  { %1869 = vst [vmem:[#allocation6_spill] sm:$0xff] %v1783_v43  ;;  %v1260_v45 = vpop.f32.mrf.mxu0  ;;  %v1323_v35 = vadd.f32 %v1322_v44, %v1321_v41 }
  0xfc   :  { %v1324_v46 = vpop.f32.mrf.mxu1 }
  0xfd   :  { %v1261_v47 = vpop.f32.mrf.mxu0 }
  0xfe   :  { %v1325_v48 = vpop.f32.mrf.mxu1  ;;  %v1262_v36 = vadd.f32 %v1261_v47, %v1260_v45  ;;  %v1798_v45 = vadd.f32 %v1323_v35, %v1259_v34 }
  0xff   :  { %v1263_v49 = vpop.f32.mrf.mxu0  ;;  %v1326_v37 = vadd.f32 %v1325_v48, %v1324_v46  ;;  %v1803_v48 = vld [vmem:[%s1866_s3] ss:$0 sm:$0xff]  ;;  %s1050_s3 = sshll.u32 %s1515_s2, 4  ;;  %s1051_s3 = int_to_ptr.vmem [resolvable:$true] %s1050_s3 }
 0x100   :  { %v1327_v50 = vpop.f32.mrf.mxu1  ;;  %s1493_s12 = scalar_lea.vmem %s1051_s3, 1024  ;;  %p1498_p1 = scmp.lt.s32.totalorder %s1051_s3, %s1051_s3 }
 0x101   :  { %v1264_v51 = vpop.f32.mrf.mxu0  ;;  %v736_v44 = vadd.f32 %v1326_v37, %v1262_v36  ;;  %p1494_p0 = scmp.ne.s32.totalorder %s1051_s3, %s1493_s12  ;;  %p1499_p2 = scmp.lt.s32.totalorder %s1493_s12, %s1493_s12 }
 0x102   :  { %v1328_v52 = vpop.f32.mrf.mxu1 }
 0x103   :  { %v1266_v53 = vpop.f32.mrf.mxu0  ;;  %p1500_p3 = por %p1499_p2, %p1498_p1 }
 0x104   :  { %v1330_v54 = vpop.f32.mrf.mxu1 }
 0x105   :  { %v1267_v55 = vpop.f32.mrf.mxu0  ;;  %p1501_p4 = pnand %p1500_p3, %p1494_p0 }
 0x106   :  { %v1331_v56 = vpop.f32.mrf.mxu1  ;;  %v1268_v39 = vadd.f32 %v1267_v55, %v1266_v53 }
 0x107   :  { %v1269_v57 = vpop.f32.mrf.mxu0  ;;  %v1332_v43 = vadd.f32 %v1331_v56, %v1330_v54 }
 0x108   :  { %v1333_v58 = vpop.f32.mrf.mxu1 }
 0x109   :  { %v1270_v59 = vpop.f32.mrf.mxu0 }
 0x10a   :  { %v1334_v60 = vpop.f32.mrf.mxu1  ;;  %v1271_v25 = vadd.f32 %v1270_v59, %v1269_v57 }
 0x10b   :  { %v1272_v61 = vpop.f32.mrf.mxu0  ;;  %v1335_v26 = vadd.f32 %v1334_v60, %v1333_v58 }
 0x10c   :  { %v1336_v62 = vpop.f32.mrf.mxu1 }
 0x10d   :  { %v1273_v63 = vpop.f32.mrf.mxu0  ;;  %v747_v55 = vadd.f32 %v1335_v26, %v1271_v25 }
 0x10e   :  { %v1337_v0 = vpop.f32.mrf.mxu1  ;;  %v1274_v22 = vadd.f32 %v1273_v63, %v1272_v61 }
 0x10f   :  { %v1275_v1 = vpop.f32.mrf.mxu0  ;;  %v1338_v23 = vadd.f32 %v1337_v0, %v1336_v62 }
 0x110   :  { %v1339_v2 = vpop.f32.mrf.mxu1 }
 0x111   :  { %v1276_v3 = vpop.f32.mrf.mxu0  ;;  %v752_v33 = vadd.f32 %v1338_v23, %v1274_v22 }
 0x112   :  { %v1340_v4 = vpop.f32.mrf.mxu1  ;;  %v1277_v29 = vadd.f32 %v1276_v3, %v1275_v1 }
 0x113   :  { %v1278_v5 = vpop.f32.mrf.mxu0  ;;  %v1341_v30 = vadd.f32 %v1340_v4, %v1339_v2 }
 0x114   :  { %v1342_v6 = vpop.f32.mrf.mxu1 }
 0x115   :  { %v1279_v7 = vpop.f32.mrf.mxu0  ;;  %v755_v61 = vadd.f32 %v1341_v30, %v1277_v29 }
 0x116   :  { %v1343_v8 = vpop.f32.mrf.mxu1  ;;  %v1280_v46 = vadd.f32 %v1279_v7, %v1278_v5 }
 0x117   :  { %v1785_v9 = vpop.f32.mrf.mxu0  ;;  %v1344_v47 = vadd.f32 %v1343_v8, %v1342_v6 }
 0x118   :  { %v1787_v10 = vpop.f32.mrf.mxu1 }
 0x119   :  { %1870 = vst [vmem:[#allocation7_spill] sm:$0xff] %v1787_v10  ;;  %v1789_v11 = vpop.f32.mrf.mxu0  ;;  %v1265_v10 = vadd.f32 %v1264_v51, %v1263_v49  ;;  %v744_v51 = vadd.f32 %v1332_v43, %v1268_v39  ;;  %v760_v5 = vadd.f32 %v1344_v47, %v1280_v46  ;;  %v1876_v39 = vld [vmem:[#allocation5_spill] sm:$0xff]  ;;  %v1877_v46 = vld [vmem:[#allocation6_spill] sm:$0xff] }
 0x11a   :  { %1871 = vst [vmem:[#allocation8_spill] sm:$0xff] %v1789_v11  ;;  %v1791_v12 = vpop.f32.mrf.mxu1  ;;  %v1329_v11 = vadd.f32 %v1328_v52, %v1327_v50 }
 0x11b   :  { %1872 = vst [vmem:[#allocation9_spill] sm:$0xff] %v1791_v12  ;;  %v1284_v13 = vpop.f32.mrf.mxu0  ;;  %v720_v12 = vadd.f32 %v1314_v16, %v1250_v15 }
 0x11c   :  { %v1348_v14 = vpop.f32.mrf.mxu1  ;;  %v1807_v56 = vadd.f32 %v1329_v11, %v1265_v10 }
 0x11d   :  { %v1285_v17 = vpop.f32.mrf.mxu0 }
 0x11e   :  { %v1349_v18 = vpop.f32.mrf.mxu1  ;;  %v1286_v57 = vadd.f32 %v1285_v17, %v1284_v13 }
 0x11f   :  { %v1287_v24 = vpop.f32.mrf.mxu0  ;;  %v1350_v62 = vadd.f32 %v1349_v18, %v1348_v14 }
 0x120   :  { %v1351_v38 = vpop.f32.mrf.mxu1  ;;  %v1874_v13 = vld [vmem:[#allocation7_spill] sm:$0xff] }
 0x121   :  { %v1288_v28 = vpop.f32.mrf.mxu0  ;;  %v1873_v11 = vld [vmem:[#allocation8_spill] sm:$0xff]  ;;  %v768_v22 = vadd.f32 %v1350_v62, %v1286_v57 }
 0x122   :  { %v1352_v27 = vpop.f32.mrf.mxu1  ;;  %v1875_v14 = vld [vmem:[#allocation9_spill] sm:$0xff]  ;;  %v1289_v19 = vadd.f32 %v1288_v28, %v1287_v24 }
 0x123   :  { %v1376_v31 = vpop.f32.mrf.mxu0  ;;  %v1822_v15 = vadd.f32 %v1875_v14, %v1874_v13  ;;  %v1353_v34 = vadd.f32 %v1352_v27, %v1351_v38 }
 0x124   :  { %v817_v40 = vadd.f32 %v1376_v31, %v720_v12  ;;  %v1384_v41 = vpop.f32.mrf.mxu1  ;;  %v1818_v12 = vadd.f32 %v1873_v11, %v1785_v9 }
 0x125   :  { %v849_v49 = vadd.f32 %v1384_v41, %v752_v33  ;;  %v808_v50 = vpop.f32.mrf.mxu0 }
 0x126   :  { %v880_v52 = vmul.f32 %v1796_v32, %v817_v40  ;;  %v809_v53 = vadd.f32 %v808_v50, %v1779_v21  ;;  %v840_v54 = vpop.f32.mrf.mxu1 }
 0x127   :  { %v888_v58 = vmul.f32 %v1796_v32, %v849_v49  ;;  %v841_v59 = vadd.f32 %v840_v54, %v744_v51  ;;  %v1377_v60 = vpop.f32.mrf.mxu0 }
 0x128   :  { %v903_v63 = vadd.f32 %v1803_v48, %v880_v52  ;;  %v878_v0 = vmul.f32 %v1796_v32, %v809_v53  ;;  %v820_v43 = vadd.f32 %v1377_v60, %v723_v42  ;;  %v1385_v1 = vpop.f32.mrf.mxu1 }
 0x129   :  { %v911_v2 = vadd.f32 %v1803_v48, %v888_v58  ;;  %v886_v21 = vmul.f32 %v1796_v32, %v841_v59  ;;  %v852_v3 = vadd.f32 %v1385_v1, %v755_v61  ;;  %v811_v4 = vpop.f32.mrf.mxu0 }
 0x12a   :  { %vm919_vm1 = vcmp.gt.f32.partialorder %v903_v63, 0.0  ;;  %v935_v6 = vmul.f32 0.1, %v903_v63  ;;  %v901_v7 = vadd.f32 %v1803_v48, %v878_v0  ;;  %v881_v8 = vmul.f32 %v1796_v32, %v820_v43  ;;  %v843_v10 = vpop.f32.mrf.mxu1 }
 0x12b   :  { %v943_v16 = vmul.f32 0.1, %v911_v2  ;;  %v889_v17 = vmul.f32 %v1796_v32, %v852_v3  ;;  %v1380_v18 = vpop.f32.mrf.mxu0  ;;  %vm927_vm2 = vcmp.gt.f32.partialorder %v911_v2, 0.0  ;;  %v909_v9 = vadd.f32 %v1803_v48, %v886_v21 }
 0x12c   :  { %v904_v20 = vadd.f32 %v1803_v48, %v881_v8  ;;  %v1388_v23 = vpop.f32.mrf.mxu1  ;;  %v951_v35 = vsel %vm919_vm1, %v903_v63, %v935_v6  ;;  %vm917_vm3 = vcmp.gt.f32.partialorder %v901_v7, 0.0  ;;  %v812_v25 = vadd.f32 %v811_v4, %v1876_v39 }
 0x12d   :  { %v912_v36 = vadd.f32 %v1803_v48, %v889_v17  ;;  %v824_v26 = vpop.f32.mrf.mxu0  ;;  %v959_v29 = vsel %vm927_vm2, %v911_v2, %v943_v16  ;;  %v844_v24 = vadd.f32 %v843_v10, %v747_v55  ;;  %v833_v27 = vadd.f32 %v1380_v18, %v736_v44 }
 0x12e   :  { %vm920_vm4 = vcmp.gt.f32.partialorder %v904_v20, 0.0  ;;  %v936_v37 = vmul.f32 0.1, %v904_v20  ;;  %v856_v30 = vpop.f32.mrf.mxu1  ;;  %v879_v38 = vmul.f32 %v1796_v32, %v812_v25  ;;  %v865_v33 = vadd.f32 %v1388_v23, %v768_v22 }
 0x12f   :  { %vm928_vm5 = vcmp.gt.f32.partialorder %v912_v36, 0.0  ;;  %v944_v28 = vmul.f32 0.1, %v912_v36  ;;  %v887_v42 = vmul.f32 %v1796_v32, %v844_v24  ;;  %v825_v47 = vadd.f32 %v824_v26, %v1877_v46  ;;  %v1381_v53 = vpop.f32.mrf.mxu0 }
 0x130   :  { %v952_v31 = vsel %vm920_vm4, %v904_v20, %v936_v37  ;;  %v933_v49 = vmul.f32 0.1, %v901_v7  ;;  %v902_v51 = vadd.f32 %v1803_v48, %v879_v38  ;;  %v884_v52 = vmul.f32 %v1796_v32, %v833_v27  ;;  %v1389_v58 = vpop.f32.mrf.mxu1 }
 0x131   :  { %v1187_v40 = vpack.c.bf16 %v952_v31, %v951_v35  ;;  %v960_v41 = vsel %vm928_vm5, %v912_v36, %v944_v28  ;;  %v941_v54 = vmul.f32 0.1, %v909_v9  ;;  %v910_v55 = vadd.f32 %v1803_v48, %v887_v42  ;;  %v827_v21 = vpop.f32.mrf.mxu0 }
 0x132   :  { %v1207_v50 = vpack.c.bf16 %v960_v41, %v959_v29  ;;  %v892_v44 = vmul.f32 %v1796_v32, %v865_v33  ;;  %v857_v57 = vadd.f32 %v856_v30, %v760_v5  ;;  %vm925_vm6 = vcmp.gt.f32.partialorder %v909_v9, 0.0  ;;  %v859_v8 = vpop.f32.mrf.mxu1 }
 0x133   :  { %1219 = vst [vmem:[#allocation2 + $0x8] sm:$0xff] %v1187_v40   ;;  %vm918_vm7 = vcmp.gt.f32.partialorder %v902_v51, 0.0  ;;  %v934_v59 = vmul.f32 0.1, %v902_v51  ;;  %v882_v60 = vmul.f32 %v1796_v32, %v825_v47  ;;  %vm926_vm8 = vcmp.gt.f32.partialorder %v910_v55, 0.0 }
 0x134   :  { %1223 = vst [vmem:[#allocation2 + $0x28] sm:$0xff] %v1207_v50   ;;  %v942_v61 = vmul.f32 0.1, %v910_v55  ;;  %v836_v62 = vadd.f32 %v1381_v53, %v1807_v56  ;;  %v771_v63 = vadd.f32 %v1353_v34, %v1289_v19  ;;  %v949_v0 = vsel %vm917_vm3, %v901_v7, %v933_v49 }
 0x135   :  { %v950_v43 = vsel %vm918_vm7, %v902_v51, %v934_v59  ;;  %v907_v1 = vadd.f32 %v1803_v48, %v884_v52  ;;  %v890_v2 = vmul.f32 %v1796_v32, %v857_v57  ;;  %v957_v3 = vsel %vm925_vm6, %v909_v9, %v941_v54 }
 0x136   :  { %v1182_v4 = vpack.c.bf16 %v950_v43, %v949_v0  ;;  %v958_v5 = vsel %vm926_vm8, %v910_v55, %v942_v61  ;;  %v915_v6 = vadd.f32 %v1803_v48, %v892_v44  ;;  %v905_v11 = vadd.f32 %v1803_v48, %v882_v60 }
 0x137   :  { %v1202_v10 = vpack.c.bf16 %v958_v5, %v957_v3  ;;  %v763_v56 = vadd.f32 %v1822_v15, %v1818_v12  ;;  %v885_v7 = vmul.f32 %v1796_v32, %v836_v62  ;;  %v868_v13 = vadd.f32 %v1389_v58, %v771_v63 }
 0x138   :  { %1183 = vst [vmem:[#allocation2] sm:$0xff] %v1182_v4   ;;  %v828_v14 = vadd.f32 %v827_v21, %v1798_v45  ;;  %vm923_vm9 = vcmp.gt.f32.partialorder %v907_v1, 0.0  ;;  %v939_v16 = vmul.f32 0.1, %v907_v1  ;;  %v913_v17 = vadd.f32 %v1803_v48, %v890_v2 }
 0x139   :  { %1222 = vst [vmem:[#allocation2 + $0x20] sm:$0xff] %v1202_v10   ;;  %v860_v18 = vadd.f32 %v859_v8, %v763_v56  ;;  %vm931_vm10 = vcmp.gt.f32.partialorder %v915_v6, 0.0  ;;  %v908_v19 = vadd.f32 %v1803_v48, %v885_v7  ;;  %v893_v20 = vmul.f32 %v1796_v32, %v868_v13 }
 0x13a   :  { %v883_v22 = vmul.f32 %v1796_v32, %v828_v14  ;;  %v947_v12 = vmul.f32 0.1, %v915_v6  ;;  %vm921_vm11 = vcmp.gt.f32.partialorder %v905_v11, 0.0  ;;  %v937_v15 = vmul.f32 0.1, %v905_v11 }
 0x13b   :  { %v891_v23 = vmul.f32 %v1796_v32, %v860_v18  ;;  %vm924_vm12 = vcmp.gt.f32.partialorder %v908_v19, 0.0  ;;  %v940_v45 = vmul.f32 0.1, %v908_v19  ;;  %v916_v34 = vadd.f32 %v1803_v48, %v893_v20 }
 0x13c   :  { %v906_v35 = vadd.f32 %v1803_v48, %v883_v22  ;;  %v955_v9 = vsel %vm923_vm9, %v907_v1, %v939_v16  ;;  %vm929_vm13 = vcmp.gt.f32.partialorder %v913_v17, 0.0  ;;  %v945_v36 = vmul.f32 0.1, %v913_v17 }
 0x13d   :  { %v914_v37 = vadd.f32 %v1803_v48, %v891_v23  ;;  %v956_v39 = vsel %vm924_vm12, %v908_v19, %v940_v45  ;;  %vm932_vm14 = vcmp.gt.f32.partialorder %v916_v34, 0.0  ;;  %v948_v25 = vmul.f32 0.1, %v916_v34 }
 0x13e   :  { %vm922_vm15 = vcmp.gt.f32.partialorder %v906_v35, 0.0  ;;  %v1197_v26 = vpack.c.bf16 %v956_v39, %v955_v9  ;;  %v938_v29 = vmul.f32 0.1, %v906_v35  ;;  %v963_v28 = vsel %vm931_vm10, %v915_v6, %v947_v12 }
 0x13f   :  { %vm930_vm0 = vcmp.gt.f32.partialorder %v914_v37, 0.0  ;;  %v946_v32 = vmul.f32 0.1, %v914_v37  ;;  %v953_v24 = vsel %vm921_vm11, %v905_v11, %v937_v15  ;;  %v964_v30 = vsel %vm932_vm14, %v916_v34, %v948_v25 }
 0x140   :  { %v961_v31 = vsel %vm929_vm13, %v913_v17, %v945_v36  ;;  %1221 = vst [vmem:[#allocation2 + $0x18] sm:$0xff] %v1197_v26   ;;  %v1217_v38 = vpack.c.bf16 %v964_v30, %v963_v28  ;;  %v954_v48 = vsel %vm922_vm15, %v906_v35, %v938_v29 }
 0x141   :  { %v962_v27 = vsel %vm930_vm0, %v914_v37, %v946_v32  ;;  %v1192_v33 = vpack.c.bf16 %v954_v48, %v953_v24 }
 0x142   :  { %v1212_v40 = vpack.c.bf16 %v962_v27, %v961_v31  ;;  %1225 = vst [vmem:[#allocation2 + $0x38] sm:$0xff] %v1217_v38  }
 0x143   :  { %1220 = vst [vmem:[#allocation2 + $0x10] sm:$0xff] %v1192_v33  }
 0x144   :  { %1224 = vst [vmem:[#allocation2 + $0x30] sm:$0xff] %v1212_v40  }
 0x145   :  { %1504 = shalt.err (!%p1501_p4)
}
 0x146   :  { %s1516_s13 = smov 64   ;;  %s1517_s14 = smov 4  }
 0x147   :  { %1056 = dma.vmem_to_hbm [thread:$0]  %s1051_s3, 1024, %s1867_s4, [#allocation3], %s1516_s13, %s1516_s13, %s1517_s14  }
 0x148   :  { %1513 = dma.done.wait [#allocation3], 1024  }
 0x149   :  { %1514 = vsyncadd [#allocation3], 4294966272 }
 0x14a   :  { %1060 = vsyncpa [#allocation3], 1 }

</bundles_post_ra>
